<compile_context>
chip_gen: v6e
topology: v6e:2x2x1
jax: 0.10.0
libtpu: 0.0.40
codegen_flags: <defaults>
</compile_context>

<pallas_src>
import jax
import jax.numpy as jnp
from jax.experimental import pallas as pl
from jax.experimental.pallas import tpu as pltpu


def _round_up(v, m):
    return ((v + m - 1) // m) * m


def _sublane(dtype):
    # Sublane packing multiple: 8 for 4-byte, 16 for 2-byte, 32 for 1-byte.
    return max(8, 32 // jnp.dtype(dtype).itemsize)


def _vmem_cap_bytes():
    # Generation-aware VMEM budget (v5e/v6e ~128 MiB, v7x ~64 MiB) w/ headroom.
    try:
        cap = int(pltpu.get_tpu_info().vmem_capacity_bytes)
    except Exception:
        cap = 64 << 20
    return int(cap * 85 // 100)


# ---------------------------------------------------------------------------
# Variant A: full weights resident in VMEM (v5e/v6e-friendly, small models).
# ---------------------------------------------------------------------------
def _projector_resident_kernel(x_ref, w1_ref, b1_ref, w2_ref, b2_ref, o_ref):
    h = jnp.dot(x_ref[...], w1_ref[...], preferred_element_type=jnp.float32)
    h = h + b1_ref[...].astype(jnp.float32)
    # "gelu_new" == tanh-approximate GELU.  Kept in f32 (safe on v5e; on
    # v6e/v7x a bf16 epilogue is a further optional micro-opt).
    h = jax.nn.gelu(h, approximate=True)
    y = jnp.dot(h.astype(w2_ref.dtype), w2_ref[...],
                preferred_element_type=jnp.float32)
    y = y + b2_ref[...].astype(jnp.float32)
    o_ref[...] = y.astype(o_ref.dtype)


# ---------------------------------------------------------------------------
# Variant B: intermediate dim tiled as a reduction axis (bounded VMEM, v7x).
# ---------------------------------------------------------------------------
def _projector_reduction_kernel(x_ref, w1_ref, b1_ref, w2_ref, b2_ref,
                                o_ref, acc_ref):
    k = pl.program_id(1)

    @pl.when(k == 0)
    def _init():
        # Fold linear_2's bias into the accumulator initialization.
        acc_ref[...] = jnp.broadcast_to(
            b2_ref[...].astype(jnp.float32), acc_ref.shape)

    h = jnp.dot(x_ref[...], w1_ref[...], preferred_element_type=jnp.float32)
    h = h + b1_ref[...].astype(jnp.float32)
    h = jax.nn.gelu(h, approximate=True)

    acc_ref[...] += jnp.dot(h.astype(w2_ref.dtype), w2_ref[...],
                            preferred_element_type=jnp.float32)

    @pl.when(k == pl.num_programs(1) - 1)
    def _finalize():
        o_ref[...] = acc_ref[...].astype(o_ref.dtype)


def tiny_llava_projector(x, w1, b1, w2, b2, *, tm=1024, ti=1024,
                         weights_resident=None):
    """x: [T, H]; w1: [H, I]; b1: [I]; w2: [I, H]; b2: [H]."""
    T, H = x.shape
    Hw, I = w1.shape
    assert Hw == H and w2.shape == (I, H) and b1.shape == (I,) and b2.shape == (H,)

    itemsize = x.dtype.itemsize
    sub = _sublane(x.dtype)
    vmem_cap = _vmem_cap_bytes()

    # --- token tile -------------------------------------------------------
    tm = max(sub, _round_up(min(tm, _round_up(T, sub)), sub))
    Tp = _round_up(T, tm)
    # Keep >= 2 parallel token tiles when there is enough work so the
    # "parallel" axis can be sharded across v7x's two TensorCores.
    if Tp // tm == 1 and tm >= 512:
        tm = _round_up((tm + 1) // 2, sub)
        Tp = _round_up(T, tm)

    weight_bytes = ((H * I) * w1.dtype.itemsize + (I * H) * w2.dtype.itemsize
                    + I * b1.dtype.itemsize + H * b2.dtype.itemsize)

    # --- choose variant ----------------------------------------------------
    # Resident-variant estimate (2x on weights: Pallas double-buffers inputs).
    resident_bytes = (2 * weight_bytes
                      + 2 * 2 * tm * H * itemsize   # double-buffered x/out tiles
                      + tm * I * 4                  # f32 intermediate h
                      + (4 << 20))
    if weights_resident is None:
        weights_resident = resident_bytes <= vmem_cap

    b2_2d = b2.reshape(1, H)

    if weights_resident:
        if Tp != T:
            x = jnp.pad(x, ((0, Tp - T), (0, 0)))
        b1_2d = b1.reshape(1, I)
        grid = (Tp // tm,)
        cost = pl.CostEstimate(
            flops=int(4 * Tp * H * I),
            transcendentals=int(Tp * I),
            bytes_accessed=int(Tp * H * itemsize * 2 + weight_bytes))
        vmem_bytes = int(min(max(resident_bytes, 16 << 20), vmem_cap))

        out = pl.pallas_call(
            _projector_resident_kernel,
            out_shape=jax.ShapeDtypeStruct((Tp, H), x.dtype),
            grid=grid,
            in_specs=[
                pl.BlockSpec((tm, H), lambda i: (i, 0)),   # x token tile
                pl.BlockSpec((H, I), lambda i: (0, 0)),    # full W1 (resident)
                pl.BlockSpec((1, I), lambda i: (0, 0)),    # b1
                pl.BlockSpec((I, H), lambda i: (0, 0)),    # full W2 (resident)
                pl.BlockSpec((1, H), lambda i: (0, 0)),    # b2
            ],
            out_specs=pl.BlockSpec((tm, H), lambda i: (i, 0)),
            compiler_params=pltpu.CompilerParams(
                dimension_semantics=("parallel",),
                vmem_limit_bytes=vmem_bytes),
            cost_estimate=cost,
        )(x, w1, b1_2d, w2, b2_2d)
        return out[:T]

    # --- reduction variant --------------------------------------------------
    ti = max(128, _round_up(min(ti, _round_up(I, 128)), 128))

    def _red_bytes(tm_, ti_):
        tile = (tm_ * H * itemsize                    # x tile
                + H * ti_ * w1.dtype.itemsize         # W1 slice
                + ti_ * H * w2.dtype.itemsize         # W2 slice
                + 8 * ti_ * b1.dtype.itemsize         # b1 slice (padded)
                + 8 * H * b2.dtype.itemsize           # b2 (padded)
                + tm_ * H * itemsize)                 # out tile
        return (2 * tile                              # double-buffered
                + tm_ * H * 4                         # f32 accumulator scratch
                + tm_ * ti_ * 4                       # f32 intermediate h
                + (4 << 20))

    # Shrink ti, then tm, until the working set fits the VMEM budget.
    while _red_bytes(tm, ti) > vmem_cap and ti > 128:
        ti = max(128, _round_up(ti // 2, 128))
    while _red_bytes(tm, ti) > vmem_cap and tm > sub:
        tm = max(sub, _round_up(tm // 2, sub))
    Tp = _round_up(T, tm)
    Ip = _round_up(I, ti)

    # Zero-pad ragged dims (padded W1 cols / W2 rows contribute nothing).
    if Tp != T:
        x = jnp.pad(x, ((0, Tp - T), (0, 0)))
    if Ip != I:
        w1 = jnp.pad(w1, ((0, 0), (0, Ip - I)))
        b1 = jnp.pad(b1, ((0, Ip - I),))
        w2 = jnp.pad(w2, ((0, Ip - I), (0, 0)))
    b1_2d = b1.reshape(1, Ip)

    grid = (Tp // tm, Ip // ti)
    cost = pl.CostEstimate(
        flops=int(4 * Tp * H * Ip),
        transcendentals=int(Tp * Ip),
        bytes_accessed=int(Tp * H * itemsize * 2
                           + (Tp // tm) * (H * Ip * w1.dtype.itemsize
                                           + Ip * H * w2.dtype.itemsize)))
    vmem_bytes = int(min(max(_red_bytes(tm, ti), 16 << 20), vmem_cap))

    out = pl.pallas_call(
        _projector_reduction_kernel,
        out_shape=jax.ShapeDtypeStruct((Tp, H), x.dtype),
        grid=grid,
        in_specs=[
            pl.BlockSpec((tm, H), lambda i, k: (i, 0)),   # x token tile
            pl.BlockSpec((H, ti), lambda i, k: (0, k)),   # W1 column slice
            pl.BlockSpec((1, ti), lambda i, k: (0, k)),   # b1 slice
            pl.BlockSpec((ti, H), lambda i, k: (k, 0)),   # W2 row slice
            pl.BlockSpec((1, H), lambda i, k: (0, 0)),    # b2
        ],
        out_specs=pl.BlockSpec((tm, H), lambda i, k: (i, 0)),
        scratch_shapes=[pltpu.VMEM((tm, H), jnp.float32)],
        compiler_params=pltpu.CompilerParams(
            dimension_semantics=("parallel", "arbitrary"),
            vmem_limit_bytes=vmem_bytes),
        cost_estimate=cost,
    )(x, w1, b1_2d, w2, b2_2d)
    return out[:T]


def _reference(x, w1, b1, w2, b2):
    h = x.astype(jnp.float32) @ w1.astype(jnp.float32) + b1.astype(jnp.float32)
    h = jax.nn.gelu(h, approximate=True)
    y = h @ w2.astype(jnp.float32) + b2.astype(jnp.float32)
    return y.astype(x.dtype)


if __name__ == "__main__":
    # Small-but-aligned config: hidden_size=128, intermediate_size=256.
    B, S, H, I = 2, 8, 128, 256
    key = jax.random.PRNGKey(0)
    k_x, k_w1, k_b1, k_w2, k_b2 = jax.random.split(key, 5)

    image_features = jax.random.normal(k_x, (B, S, H), dtype=jnp.float32)
    # PyTorch stores Linear weight as [out, in]; kernel takes [in, out] so it
    # computes plain x @ W + b.
    w1 = jax.random.normal(k_w1, (H, I), dtype=jnp.float32) * 0.02
    b1 = jax.random.normal(k_b1, (I,), dtype=jnp.float32) * 0.02
    w2 = jax.random.normal(k_w2, (I, H), dtype=jnp.float32) * 0.02
    b2 = jax.random.normal(k_b2, (H,), dtype=jnp.float32) * 0.02

    # 1) main check (f32; auto-selects the weights-resident variant here).
    x_tokens = image_features.reshape(B * S, H)
    out = tiny_llava_projector(x_tokens, w1, b1, w2, b2)
    jax.block_until_ready(out)
    ref = _reference(x_tokens, w1, b1, w2, b2)
    assert out.shape == (B * S, H)
    assert jnp.allclose(out, ref, atol=1e-4, rtol=1e-4), "f32 mismatch vs reference"

    # 2) forced reduction variant, ragged token count, multi-tile grid
    #    (exercises padding, the f32 accumulator and the bias-fold init).
    x_ragged = x_tokens[:13]
    out_r = tiny_llava_projector(x_ragged, w1, b1, w2, b2,
                                 tm=8, ti=128, weights_resident=False)
    jax.block_until_ready(out_r)
    ref_r = _reference(x_ragged, w1, b1, w2, b2)
    assert out_r.shape == (13, H)
    assert jnp.allclose(out_r, ref_r, atol=1e-4, rtol=1e-4), "reduction mismatch"

    # 3) bf16 path: operands go to the MXU natively in bf16, f32 accumulation.
    xb = x_tokens.astype(jnp.bfloat16)
    w1b, b1b = w1.astype(jnp.bfloat16), b1.astype(jnp.bfloat16)
    w2b, b2b = w2.astype(jnp.bfloat16), b2.astype(jnp.bfloat16)
    out_b = tiny_llava_projector(xb, w1b, b1b, w2b, b2b)
    jax.block_until_ready(out_b)
    ref_b = _reference(xb, w1b, b1b, w2b, b2b)
    assert jnp.allclose(out_b.astype(jnp.float32), ref_b.astype(jnp.float32),
                        atol=2e-2, rtol=2e-2), "bf16 mismatch vs reference"

    # 4) bf16 + forced reduction variant (sublane-16 tm rounding path).
    out_br = tiny_llava_projector(xb, w1b, b1b, w2b, b2b,
                                  ti=128, weights_resident=False)
    jax.block_until_ready(out_br)
    assert jnp.allclose(out_br.astype(jnp.float32), ref_b.astype(jnp.float32),
                        atol=2e-2, rtol=2e-2), "bf16 reduction mismatch"

    print("KERNEL_OK")
</pallas_src>

<mosaic_0001>
module attributes {stable_mosaic.version = 11 : i64} {
  func.func @_projector_resident_kernel(%arg0: i32, %arg1: memref<16x128xf32, #tpu.memory_space<vmem>>, %arg2: memref<128x256xf32, #tpu.memory_space<vmem>>, %arg3: memref<1x256xf32, #tpu.memory_space<vmem>>, %arg4: memref<256x128xf32, #tpu.memory_space<vmem>>, %arg5: memref<1x128xf32, #tpu.memory_space<vmem>>, %arg6: memref<16x128xf32, #tpu.memory_space<vmem>>) attributes {dimension_semantics = [#tpu.dimension_semantics<parallel>], iteration_bounds = array<i64: 1>, scalar_prefetch = 0 : i64, scratch_operands = 0 : i64, tpu.core_type = #tpu.core_type<tc>, window_params = [{transform_indices = @transform_0, window_bounds = array<i64: 16, 128>}, {pipeline_mode = #tpu.pipeline_mode<synchronous>, transform_indices = @transform_1, window_bounds = array<i64: 128, 256>}, {pipeline_mode = #tpu.pipeline_mode<synchronous>, transform_indices = @transform_2, window_bounds = array<i64: 1, 256>}, {pipeline_mode = #tpu.pipeline_mode<synchronous>, transform_indices = @transform_3, window_bounds = array<i64: 256, 128>}, {pipeline_mode = #tpu.pipeline_mode<synchronous>, transform_indices = @transform_4, window_bounds = array<i64: 1, 128>}, {transform_indices = @transform_5, window_bounds = array<i64: 16, 128>}]} {
    %c0 = arith.constant 0 : index
    %c0_0 = arith.constant 0 : index
    %0 = vector.load %arg1[%c0, %c0_0] : memref<16x128xf32, #tpu.memory_space<vmem>>, vector<16x128xf32>
    %c0_1 = arith.constant 0 : index
    %c0_2 = arith.constant 0 : index
    %1 = vector.load %arg2[%c0_1, %c0_2] : memref<128x256xf32, #tpu.memory_space<vmem>>, vector<128x256xf32>
    %cst = arith.constant dense<0.000000e+00> : vector<16x256xf32>
    %2 = tpu.matmul %0, %1, %cst {dimension_numbers = #tpu.dot_dimension_numbers<[1], [0], [0], [1], [0, 0, 1, 1], [], []>} : vector<16x128xf32>, vector<128x256xf32>, vector<16x256xf32> -> vector<16x256xf32>
    %c0_3 = arith.constant 0 : index
    %c0_4 = arith.constant 0 : index
    %3 = vector.load %arg3[%c0_3, %c0_4] : memref<1x256xf32, #tpu.memory_space<vmem>>, vector<1x256xf32>
    %4 = vector.broadcast %3 : vector<1x256xf32> to vector<16x256xf32>
    %5 = arith.addf %2, %4 : vector<16x256xf32>
    %6 = arith.mulf %5, %5 : vector<16x256xf32>
    %7 = arith.mulf %5, %6 : vector<16x256xf32>
    %cst_5 = arith.constant 4.471500e-02 : f32
    %8 = vector.broadcast %cst_5 : f32 to vector<16x256xf32>
    %9 = arith.mulf %8, %7 : vector<16x256xf32>
    %10 = arith.addf %5, %9 : vector<16x256xf32>
    %cst_6 = arith.constant 0.797884583 : f32
    %11 = vector.broadcast %cst_6 : f32 to vector<16x256xf32>
    %12 = arith.mulf %11, %10 : vector<16x256xf32>
    %13 = math.tanh %12 : vector<16x256xf32>
    %cst_7 = arith.constant 1.000000e+00 : f32
    %14 = vector.broadcast %cst_7 : f32 to vector<16x256xf32>
    %15 = arith.addf %14, %13 : vector<16x256xf32>
    %cst_8 = arith.constant 5.000000e-01 : f32
    %16 = vector.broadcast %cst_8 : f32 to vector<16x256xf32>
    %17 = arith.mulf %16, %15 : vector<16x256xf32>
    %18 = arith.mulf %5, %17 : vector<16x256xf32>
    %c0_9 = arith.constant 0 : index
    %c0_10 = arith.constant 0 : index
    %19 = vector.load %arg4[%c0_9, %c0_10] : memref<256x128xf32, #tpu.memory_space<vmem>>, vector<256x128xf32>
    %cst_11 = arith.constant dense<0.000000e+00> : vector<16x128xf32>
    %20 = tpu.matmul %18, %19, %cst_11 {dimension_numbers = #tpu.dot_dimension_numbers<[1], [0], [0], [1], [0, 0, 1, 1], [], []>} : vector<16x256xf32>, vector<256x128xf32>, vector<16x128xf32> -> vector<16x128xf32>
    %c0_12 = arith.constant 0 : index
    %c0_13 = arith.constant 0 : index
    %21 = vector.load %arg5[%c0_12, %c0_13] : memref<1x128xf32, #tpu.memory_space<vmem>>, vector<1x128xf32>
    %22 = vector.broadcast %21 : vector<1x128xf32> to vector<16x128xf32>
    %23 = arith.addf %20, %22 : vector<16x128xf32>
    %c0_14 = arith.constant 0 : index
    %c0_15 = arith.constant 0 : index
    %24 = vector.load %arg6[%c0_14, %c0_15] : memref<16x128xf32, #tpu.memory_space<vmem>>, vector<16x128xf32>
    tpu.vector_store %arg6[%c0_14, %c0_15], %23 {strides = array<i32>} : memref<16x128xf32, #tpu.memory_space<vmem>>, vector<16x128xf32>,
    return
  }
  func.func @transform_0(%arg0: i32) -> (i32, i32) {
    %c0_i32 = arith.constant 0 : i32
    %c0_i32_0 = arith.constant 0 : i32
    return %arg0, %c0_i32 : i32, i32
  }
  func.func @transform_1(%arg0: i32) -> (i32, i32) {
    %c0_i32 = arith.constant 0 : i32
    %c0_i32_0 = arith.constant 0 : i32
    %c0_i32_1 = arith.constant 0 : i32
    return %c0_i32, %c0_i32_0 : i32, i32
  }
  func.func @transform_2(%arg0: i32) -> (i32, i32) {
    %c0_i32 = arith.constant 0 : i32
    %c0_i32_0 = arith.constant 0 : i32
    %c0_i32_1 = arith.constant 0 : i32
    return %c0_i32, %c0_i32_0 : i32, i32
  }
  func.func @transform_3(%arg0: i32) -> (i32, i32) {
    %c0_i32 = arith.constant 0 : i32
    %c0_i32_0 = arith.constant 0 : i32
    %c0_i32_1 = arith.constant 0 : i32
    return %c0_i32, %c0_i32_0 : i32, i32
  }
  func.func @transform_4(%arg0: i32) -> (i32, i32) {
    %c0_i32 = arith.constant 0 : i32
    %c0_i32_0 = arith.constant 0 : i32
    %c0_i32_1 = arith.constant 0 : i32
    return %c0_i32, %c0_i32_0 : i32, i32
  }
  func.func @transform_5(%arg0: i32) -> (i32, i32) {
    %c0_i32 = arith.constant 0 : i32
    %c0_i32_0 = arith.constant 0 : i32
    return %arg0, %c0_i32 : i32, i32
  }
}

</mosaic_0001>

<bundles_post_ra>
// kernel: tpu_custom_call.1
= control target key start
LH: loop header
LB: loop body
LE: loop exit
PB: predicated region body
PF: predicated region fallthrough
CT: control target
= control target key end

     0   :  { %10 = vsyncpa [#allocation3], 0  ;;  %s565_s0 = inlined_call_operand.hbm [shape: f32[16,128], index: 0, kind: input, shape index: {}]   ;;  %s566_s1 = inlined_call_operand.hbm [shape: f32[128,256], index: 1, kind: input, shape index: {}]   ;;  %s567_s2 = inlined_call_operand.vmem [shape: f32[1,256], index: 2, kind: input, shape index: {}]   ;;  %s568_s3 = inlined_call_operand.hbm [shape: f32[256,128], index: 3, kind: input, shape index: {}]   ;;  %s569_s4 = inlined_call_operand.vmem [shape: f32[1,128], index: 4, kind: input, shape index: {}]   ;;  %s570_s5 = inlined_call_operand.hbm [shape: f32[16,128], index: 5, kind: output, shape index: {}]  }
   0x1   :  { %11 = vsyncpa [#allocation6], 0 }
   0x2   :  { %12 = vsyncpa [#allocation4], 0  ;;  %s497_s18 = smov [#allocation5]  }
   0x3   :  { %s30_s19 = sshll.u32 %s497_s18, 4  ;;  %s31_s19 = int_to_ptr.vmem [resolvable:$true] %s30_s19 }
   0x4   :  { %s419_s20 = scalar_lea.vmem %s31_s19, 4096  ;;  %p424_p1 = scmp.lt.s32.totalorder %s31_s19, %s31_s19 }
   0x5   :  { %p420_p0 = scmp.ne.s32.totalorder %s31_s19, %s419_s20  ;;  %p425_p2 = scmp.lt.s32.totalorder %s419_s20, %s419_s20 }
   0x7   :  { %p426_p3 = por %p425_p2, %p424_p1 }
   0x9   :  { %p427_p4 = pnand %p426_p3, %p420_p0 }
   0xb   :  { %430 = shalt.err (!%p427_p4)
}
   0xc   :  { %s498_s21 = smov 256   ;;  %s499_s22 = smov 16  }
   0xd   :  { %36 = dma.hbm_to_vmem [thread:$0]  %s566_s1, 4096, %s31_s19, [#allocation6], %s498_s21, %s498_s21, %s499_s22  }
   0xe   :  { %s500_s25 = smov [#allocation2]  }
   0xf   :  { %s18_s26 = sshll.u32 %s500_s25, 4  ;;  %s19_s26 = int_to_ptr.vmem [resolvable:$true] %s18_s26 }
  0x10   :  { %s439_s27 = scalar_lea.vmem %s19_s26, 256  ;;  %p444_p6 = scmp.lt.s32.totalorder %s19_s26, %s19_s26 }
  0x11   :  { %p440_p5 = scmp.ne.s32.totalorder %s19_s26, %s439_s27  ;;  %p445_p7 = scmp.lt.s32.totalorder %s439_s27, %s439_s27 }
  0x13   :  { %p446_p8 = por %p445_p7, %p444_p6 }
  0x15   :  { %p447_p9 = pnand %p446_p8, %p440_p5 }
  0x17   :  { %450 = shalt.err (!%p447_p9)
}
  0x18   :  { %s501_s28 = smov 128   ;;  %s502_s29 = smov 8  }
  0x19   :  { %24 = dma.hbm_to_vmem [thread:$0]  %s565_s0, 256, %s19_s26, [#allocation3], %s501_s28, %s501_s28, %s502_s29  }
  0x1a   :  { %s503_s1 = smov [#allocation7]  }
  0x1b   :  { %s44_s7 = sshll.u32 %s503_s1, 4  ;;  %s45_s7 = int_to_ptr.vmem [resolvable:$true] %s44_s7 }
  0x1c   :  { %s459_s8 = scalar_lea.vmem %s45_s7, 4096  ;;  %p464_p11 = scmp.lt.s32.totalorder %s45_s7, %s45_s7 }
  0x1d   :  { %p460_p10 = scmp.ne.s32.totalorder %s45_s7, %s459_s8  ;;  %p465_p12 = scmp.lt.s32.totalorder %s459_s8, %s459_s8 }
  0x1f   :  { %p466_p13 = por %p465_p12, %p464_p11 }
  0x21   :  { %p467_p0 = pnand %p466_p13, %p460_p10 }
  0x23   :  { %470 = shalt.err (!%p467_p0)
}
  0x24   :  { %50 = dma.hbm_to_vmem [thread:$0]  %s568_s3, 4096, %s45_s7, [#allocation6], %s501_s28, %s501_s28, %s502_s29  }
  0x25   :  { %491 = dma.done.wait [#allocation3], 256  }
  0x26   :  { %492 = vsyncadd [#allocation3], 4294967040 }
  0x27   :  { %493 = dma.done.wait [#allocation6], 8192  }
  0x28   :  { %494 = vsyncadd [#allocation6], 4294959104  ;;  %v504_v0 = vmov 0.0   ;;  %v95_v1 = vld [vmem:[#allocation5 + $0xf8] sm:$0xff]  ;;  %v94_v2 = vld [vmem:[#allocation5 + $0xf0] sm:$0xff]  ;;  %s505_s12 = smov [#allocation8]  }
  0x29   :  { %172 = vmatprep.mubr.f32.mxu0 %v504_v0  ;;  %v93_v3 = vld [vmem:[#allocation5 + $0xe8] sm:$0xff]  ;;  %108 = vmatprep.subr.mxu0 %v95_v1  ;;  %v92_v4 = vld [vmem:[#allocation5 + $0xe0] sm:$0xff]  ;;  %v91_v5 = vld [vmem:[#allocation5 + $0xd8] sm:$0xff]  ;;  %s342_s13 = sshll.u32 %s505_s12, 4  ;;  %s343_s13 = int_to_ptr.vmem [resolvable:$true] %s342_s13 }
  0x2a   :  { %109 = vmatpush1.msra.mxu0 %v94_v2  ;;  %v90_v6 = vld [vmem:[#allocation5 + $0xd0] sm:$0xff]  ;;  %v89_v7 = vld [vmem:[#allocation5 + $0xc8] sm:$0xff]  ;;  %v88_v8 = vld [vmem:[#allocation5 + $0xc0] sm:$0xff]  ;;  %s471_s14 = scalar_lea.vmem %s343_s13, 256  ;;  %p476_p2 = scmp.lt.s32.totalorder %s343_s13, %s343_s13 }
  0x2b   :  { %110 = vmatprep.subr.mxu0 %v93_v3  ;;  %v87_v9 = vld [vmem:[#allocation5 + $0xb8] sm:$0xff]  ;;  %v86_v10 = vld [vmem:[#allocation5 + $0xb0] sm:$0xff]  ;;  %v85_v11 = vld [vmem:[#allocation5 + $0xa8] sm:$0xff]  ;;  %v98_v3 = vlaneseq  ;;  %p472_p1 = scmp.ne.s32.totalorder %s343_s13, %s471_s14  ;;  %p477_p3 = scmp.lt.s32.totalorder %s471_s14, %s471_s14 }
  0x2c   :  { %111 = vmatpush1.msra.mxu0 %v92_v4  ;;  %v84_v12 = vld [vmem:[#allocation5 + $0xa0] sm:$0xff]  ;;  %v83_v13 = vld [vmem:[#allocation5 + $0x98] sm:$0xff]  ;;  %v82_v14 = vld [vmem:[#allocation5 + $0x90] sm:$0xff] }
  0x2d   :  { %112 = vmatprep.subr.mxu0 %v91_v5  ;;  %v81_v15 = vld [vmem:[#allocation5 + $0x88] sm:$0xff]  ;;  %v80_v16 = vld [vmem:[#allocation5 + $0x80] sm:$0xff]  ;;  %v79_v17 = vld [vmem:[#allocation5 + $0x78] sm:$0xff]  ;;  %v99_v4 = vshrl.u32 %v98_v3, 7  ;;  %p478_p4 = por %p477_p3, %p476_p2 }
  0x2e   :  { %113 = vmatpush1.msra.mxu0 %v90_v6  ;;  %v78_v18 = vld [vmem:[#allocation5 + $0x70] sm:$0xff]  ;;  %v77_v19 = vld [vmem:[#allocation5 + $0x68] sm:$0xff]  ;;  %v76_v20 = vld [vmem:[#allocation5 + $0x60] sm:$0xff] }
  0x2f   :  { %114 = vmatprep.subr.mxu0 %v89_v7  ;;  %v75_v21 = vld [vmem:[#allocation5 + $0x58] sm:$0xff]  ;;  %v74_v22 = vld [vmem:[#allocation5 + $0x50] sm:$0xff]  ;;  %v73_v23 = vld [vmem:[#allocation5 + $0x48] sm:$0xff]  ;;  %v100_v5 = vsub.s32 0, %v99_v4  ;;  %v104_v7 = vsub.s32 1, %v99_v4  ;;  %p479_p5 = pnand %p478_p4, %p472_p1 }
  0x30   :  { %115 = vmatpush1.msra.mxu0 %v88_v8  ;;  %v72_v24 = vld [vmem:[#allocation5 + $0x40] sm:$0xff]  ;;  %v71_v25 = vld [vmem:[#allocation5 + $0x38] sm:$0xff]  ;;  %v70_v26 = vld [vmem:[#allocation5 + $0x30] sm:$0xff] }
  0x31   :  { %116 = vmatprep.subr.mxu0 %v87_v9  ;;  %v69_v27 = vld [vmem:[#allocation5 + $0x28] sm:$0xff]  ;;  %v68_v28 = vld [vmem:[#allocation5 + $0x20] sm:$0xff]  ;;  %v67_v29 = vld [vmem:[#allocation5 + $0x18] sm:$0xff] }
  0x32   :  { %117 = vmatpush1.msra.mxu0 %v86_v10  ;;  %v66_v30 = vld [vmem:[#allocation5 + $0x10] sm:$0xff]  ;;  %v65_v31 = vld [vmem:[#allocation5 + $0x8] sm:$0xff]  ;;  %v64_v32 = vld [vmem:[#allocation5] sm:$0xff] }
  0x33   :  { %118 = vmatprep.subr.mxu0 %v85_v11  ;;  %v62_v33 = vld [vmem:[#allocation2] sm:$0xff]  ;;  %v63_v34 = vld [vmem:[#allocation2 + $0x8] sm:$0xff]  ;;  %v250_v39 = vld [vmem:[#allocation7 + $0xe8] sm:$0xff] }
  0x34   :  { %119 = vmatpush1.msra.mxu0 %v84_v12  ;;  %v252_v35 = vld [vmem:[#allocation7 + $0xf8] sm:$0xff]  ;;  %v251_v37 = vld [vmem:[#allocation7 + $0xf0] sm:$0xff]  ;;  %v234_v40 = vld [vmem:[#allocation7 + $0x68] sm:$0xff] }
  0x35   :  { %120 = vmatprep.subr.mxu0 %v83_v13  ;;  %356 = vmatprep.subr.mxu1 %v252_v35  ;;  %v236_v36 = vld [vmem:[#allocation7 + $0x78] sm:$0xff]  ;;  %v235_v38 = vld [vmem:[#allocation7 + $0x70] sm:$0xff]  ;;  %v249_v41 = vld [vmem:[#allocation7 + $0xe0] sm:$0xff] }
  0x36   :  { %121 = vmatpush1.msra.mxu0 %v82_v14  ;;  %357 = vmatpush3.msra.mxu1 %v236_v36  ;;  %v233_v42 = vld [vmem:[#allocation7 + $0x60] sm:$0xff]  ;;  %v248_v43 = vld [vmem:[#allocation7 + $0xd8] sm:$0xff]  ;;  %v247_v45 = vld [vmem:[#allocation7 + $0xd0] sm:$0xff] }
  0x37   :  { %122 = vmatprep.subr.mxu0 %v81_v15  ;;  %358 = vmatprep.subr.mxu1 %v251_v37  ;;  %v232_v44 = vld [vmem:[#allocation7 + $0x58] sm:$0xff]  ;;  %v231_v46 = vld [vmem:[#allocation7 + $0x50] sm:$0xff]  ;;  %v246_v47 = vld [vmem:[#allocation7 + $0xc8] sm:$0xff] }
  0x38   :  { %123 = vmatpush1.msra.mxu0 %v80_v16  ;;  %359 = vmatpush3.msra.mxu1 %v235_v38  ;;  %v230_v48 = vld [vmem:[#allocation7 + $0x48] sm:$0xff]  ;;  %v245_v49 = vld [vmem:[#allocation7 + $0xc0] sm:$0xff]  ;;  %v244_v51 = vld [vmem:[#allocation7 + $0xb8] sm:$0xff] }
  0x39   :  { %124 = vmatprep.subr.mxu0 %v79_v17  ;;  %360 = vmatprep.subr.mxu1 %v250_v39  ;;  %v229_v50 = vld [vmem:[#allocation7 + $0x40] sm:$0xff]  ;;  %v228_v52 = vld [vmem:[#allocation7 + $0x38] sm:$0xff]  ;;  %v243_v53 = vld [vmem:[#allocation7 + $0xb0] sm:$0xff] }
  0x3a   :  { %125 = vmatpush1.msra.mxu0 %v78_v18  ;;  %361 = vmatpush3.msra.mxu1 %v234_v40  ;;  %v227_v54 = vld [vmem:[#allocation7 + $0x30] sm:$0xff]  ;;  %v242_v55 = vld [vmem:[#allocation7 + $0xa8] sm:$0xff]  ;;  %v241_v57 = vld [vmem:[#allocation7 + $0xa0] sm:$0xff] }
  0x3b   :  { %126 = vmatprep.subr.mxu0 %v77_v19  ;;  %362 = vmatprep.subr.mxu1 %v249_v41  ;;  %v226_v56 = vld [vmem:[#allocation7 + $0x28] sm:$0xff]  ;;  %v225_v58 = vld [vmem:[#allocation7 + $0x20] sm:$0xff]  ;;  %v240_v59 = vld [vmem:[#allocation7 + $0x98] sm:$0xff] }
  0x3c   :  { %127 = vmatpush1.msra.mxu0 %v76_v20  ;;  %363 = vmatpush3.msra.mxu1 %v233_v42  ;;  %v224_v60 = vld [vmem:[#allocation7 + $0x18] sm:$0xff]  ;;  %v239_v61 = vld [vmem:[#allocation7 + $0x90] sm:$0xff]  ;;  %v238_v63 = vld [vmem:[#allocation7 + $0x88] sm:$0xff] }
  0x3d   :  { %128 = vmatprep.subr.mxu0 %v75_v21  ;;  %364 = vmatprep.subr.mxu1 %v248_v43  ;;  %v223_v62 = vld [vmem:[#allocation7 + $0x10] sm:$0xff]  ;;  %v237_v1 = vld [vmem:[#allocation7 + $0x80] sm:$0xff] }
  0x3e   :  { %129 = vmatpush1.msra.mxu0 %v74_v22  ;;  %365 = vmatpush3.msra.mxu1 %v232_v44  ;;  %v221_v2 = vld [vmem:[#allocation7] sm:$0xff]  ;;  %v96_v6 = vld [vmem:[%s567_s2] sm:$0x3] }
  0x3f   :  { %130 = vmatprep.subr.mxu0 %v73_v23  ;;  %366 = vmatprep.subr.mxu1 %v247_v45  ;;  %v101_v8 = vrot.slane %v96_v6, %v100_v5  ;;  %v105_v9 = vrot.slane %v96_v6, %v104_v7 }
  0x40   :  { %131 = vmatpush1.msra.mxu0 %v72_v24  ;;  %367 = vmatpush3.msra.mxu1 %v231_v46 }
  0x41   :  { %132 = vmatprep.subr.mxu0 %v71_v25  ;;  %368 = vmatprep.subr.mxu1 %v246_v47 }
  0x42   :  { %133 = vmatpush1.msra.mxu0 %v70_v26  ;;  %369 = vmatpush3.msra.mxu1 %v230_v48 }
  0x43   :  { %134 = vmatprep.subr.mxu0 %v69_v27  ;;  %370 = vmatprep.subr.mxu1 %v245_v49 }
  0x44   :  { %135 = vmatpush1.msra.mxu0 %v68_v28  ;;  %371 = vmatpush3.msra.mxu1 %v229_v50 }
  0x45   :  { %136 = vmatprep.subr.mxu0 %v67_v29  ;;  %372 = vmatprep.subr.mxu1 %v244_v51 }
  0x46   :  { %137 = vmatpush1.msra.mxu0 %v66_v30  ;;  %373 = vmatpush3.msra.mxu1 %v228_v52 }
  0x47   :  { %138 = vmatprep.subr.mxu0 %v65_v31  ;;  %374 = vmatprep.subr.mxu1 %v243_v53 }
  0x48   :  { %139 = vmatpush1.msra.mxu0 %v64_v32  ;;  %375 = vmatpush3.msra.mxu1 %v227_v54 }
  0x49   :  { %173 = vmatmul.mubr.f32.vlgmr.msra.gmra.mxu0 %v62_v33  ;;  %376 = vmatprep.subr.mxu1 %v242_v55  ;;  %v355_v55 = vld [vmem:[%s569_s4] ss:$0 sm:$0xff] }
  0x4a   :  { %178 = vmatprep.mubr.f32.mxu0 %v504_v0  ;;  %377 = vmatpush3.msra.mxu1 %v226_v56  ;;  %v222_v0 = vld [vmem:[#allocation7 + $0x8] sm:$0xff] }
  0x4b   :  { %378 = vmatprep.subr.mxu1 %v241_v57 }
  0x4c   :  { %379 = vmatpush3.msra.mxu1 %v225_v58 }
  0x4d   :  { %179 = vmatmul.mubr.f32.gmra.mxu0 %v63_v34  ;;  %380 = vmatprep.subr.mxu1 %v240_v59 }
  0x4e   :  { %381 = vmatpush3.msra.mxu1 %v224_v60 }
  0x4f   :  { %382 = vmatprep.subr.mxu1 %v239_v61 }
  0x50   :  { %383 = vmatpush3.msra.mxu1 %v223_v62 }
  0x51   :  { %384 = vmatprep.subr.mxu1 %v238_v63 }
  0x52   :  { %385 = vmatpush3.msra.mxu1 %v222_v0 }
  0x53   :  { %386 = vmatprep.subr.mxu1 %v237_v1 }
  0x54   :  { %387 = vmatpush3.msra.mxu1 %v221_v2 }
 0x109   :  { %v174_v10 = vpop.f32.mrf.mxu0 }
 0x10a   :  { %v175_v11 = vadd.f32 %v174_v10, %v101_v8 }
 0x10b   :  { %v176_v12 = vpop.f32.mrf.mxu0 }
 0x10c   :  { %v185_v13 = vmul.f32 %v175_v11, %v175_v11  ;;  %v177_v14 = vadd.f32 %v176_v12, %v105_v9 }
 0x10d   :  { %v180_v15 = vpop.f32.mrf.mxu0 }
 0x10e   :  { %v189_v16 = vmul.f32 %v185_v13, %v175_v11  ;;  %v186_v17 = vmul.f32 %v177_v14, %v177_v14  ;;  %v181_v18 = vadd.f32 %v180_v15, %v101_v8 }
 0x10f   :  { %v182_v19 = vpop.f32.mrf.mxu0 }
 0x110   :  { %v193_v20 = vmul.f32 0.044715, %v189_v16  ;;  %v190_v21 = vmul.f32 %v186_v17, %v177_v14  ;;  %v187_v22 = vmul.f32 %v181_v18, %v181_v18  ;;  %v183_v23 = vadd.f32 %v182_v19, %v105_v9 }
 0x112   :  { %v197_v24 = vadd.f32 %v193_v20, %v175_v11  ;;  %v191_v25 = vmul.f32 %v187_v22, %v181_v18  ;;  %v188_v26 = vmul.f32 %v183_v23, %v183_v23  ;;  %v194_v27 = vmul.f32 0.044715, %v190_v21 }
 0x114   :  { %v201_v28 = vmul.f32 0.7978846, %v197_v24  ;;  %v195_v29 = vmul.f32 0.044715, %v191_v25  ;;  %v192_v30 = vmul.f32 %v188_v26, %v183_v23  ;;  %v198_v31 = vadd.f32 %v194_v27, %v177_v14 }
 0x116   :  { %403 = vtanh.f32 %v201_v28  ;;  %v199_v32 = vadd.f32 %v195_v29, %v181_v18  ;;  %v196_v33 = vmul.f32 0.044715, %v192_v30  ;;  %v202_v34 = vmul.f32 0.7978846, %v198_v31 }
 0x118   :  { %v203_v35 = vmul.f32 0.7978846, %v199_v32  ;;  %v200_v36 = vadd.f32 %v196_v33, %v183_v23  ;;  %405 = vtanh.f32 %v202_v34 }
 0x11a   :  { %407 = vtanh.f32 %v203_v35  ;;  %v204_v37 = vmul.f32 0.7978846, %v200_v36 }
 0x11c   :  { %409 = vtanh.f32 %v204_v37 }
 0x123   :  { %v404_v38 = vpop.eup %403 }
 0x124   :  { %v209_v39 = vadd.f32 1.0, %v404_v38 }
 0x125   :  { %v406_v40 = vpop.eup %405 }
 0x126   :  { %v210_v41 = vadd.f32 1.0, %v406_v40  ;;  %v213_v43 = vmul.f32 0.5, %v209_v39 }
 0x127   :  { %v408_v42 = vpop.eup %407 }
 0x128   :  { %v214_v44 = vmul.f32 0.5, %v210_v41  ;;  %v211_v45 = vadd.f32 1.0, %v408_v42  ;;  %v217_v49 = vmul.f32 %v213_v43, %v175_v11 }
 0x129   :  { %v410_v46 = vpop.eup %409 }
 0x12a   :  { %v218_v47 = vmul.f32 %v214_v44, %v177_v14  ;;  %v212_v48 = vadd.f32 1.0, %v410_v46  ;;  %v215_v50 = vmul.f32 0.5, %v211_v45 }
 0x12c   :  { %324 = vmatprep.mubr.f32.mxu1 %v218_v47  ;;  %v216_v51 = vmul.f32 0.5, %v212_v48  ;;  %v219_v53 = vmul.f32 %v215_v50, %v181_v18 }
 0x12d   :  { %325 = vmatmul.mubr.f32.vlgmr.msra.gmra.mxu1 %v217_v49 }
 0x12e   :  { %v220_v52 = vmul.f32 %v216_v51, %v183_v23 }
 0x130   :  { %329 = vmatprep.mubr.f32.mxu1 %v220_v52 }
 0x131   :  { %330 = vmatmul.mubr.f32.gmra.mxu1 %v219_v53 }
 0x1ed   :  { %v388_v54 = vpop.f32.mrf.mxu1 }
 0x1ef   :  { %v389_v56 = vpop.f32.mrf.mxu1 }
 0x1f0   :  { %v390_v57 = vadd.f32 %v389_v56, %v388_v54 }
 0x1f1   :  { %v391_v58 = vpop.f32.mrf.mxu1 }
 0x1f2   :  { %v327_v59 = vadd.f32 %v390_v57, %v355_v55 }
 0x1f3   :  { %v392_v60 = vpop.f32.mrf.mxu1 }
 0x1f4   :  { %335 = vst [vmem:[#allocation8] sm:$0xff] %v327_v59  ;;  %v393_v61 = vadd.f32 %v392_v60, %v391_v58 }
 0x1f6   :  { %v332_v62 = vadd.f32 %v393_v61, %v355_v55 }
 0x1f8   :  { %336 = vst [vmem:[#allocation8 + $0x8] sm:$0xff] %v332_v62 }
 0x1f9   :  { %482 = shalt.err (!%p479_p5)
}
 0x1fa   :  { %348 = dma.vmem_to_hbm [thread:$0]  %s343_s13, 256, %s570_s5, [#allocation4], %s501_s28, %s501_s28, %s502_s29  }
 0x1fb   :  { %495 = dma.done.wait [#allocation4], 256  }
 0x1fc   :  { %496 = vsyncadd [#allocation4], 4294967040 }
 0x1fd   :  { %352 = vsyncpa [#allocation3], 1 }
 0x1fe   :  { %353 = vsyncpa [#allocation6], 1 }
 0x1ff   :  { %354 = vsyncpa [#allocation4], 1 }

</bundles_post_ra>
